<compile_context>
chip_gen: v6e
topology: v6e:2x2x1
jax: 0.10.0
libtpu: 0.0.40
codegen_flags: <defaults>
</compile_context>

<pallas_src>
import jax
import jax.numpy as jnp
from jax.experimental import pallas as pl
from jax.experimental.pallas import tpu as pltpu


def _round_up(x, m):
    return ((x + m - 1) // m) * m


def _vmem_capacity_bytes():
    # Conservative fallback = 64 MiB (v7x per-TC VMEM) so we never over-tile.
    try:
        return int(pltpu.get_tpu_info().vmem_capacity_bytes)
    except Exception:
        return 64 << 20


def _f32_block_bytes(rows, cols):
    # A (rows, cols) f32 block occupies sublane-padded x lane-padded space.
    return _round_up(max(rows, 1), 8) * _round_up(max(cols, 1), 128) * 4


def _vmem_estimate_bytes(tb, state_dim, hidden, action_dim):
    blk = _f32_block_bytes
    est = 0
    est += 2 * blk(tb, state_dim)      # double-buffered input tile
    est += 2 * blk(tb, action_dim)     # double-buffered output tile
    est += 2 * (blk(state_dim, hidden) + blk(hidden, hidden)
                + blk(hidden, action_dim))                 # weights
    est += 2 * (2 * blk(1, hidden) + blk(1, action_dim))   # biases
    est += 2 * blk(tb, hidden)         # in-kernel activation temporaries
    return est


def _policy_kernel(x_ref, w1_ref, b1_ref, w2_ref, b2_ref, w3_ref, b3_ref,
                   out_ref):
    # Fused 3-layer MLP with tanh activations: 3 MXU matmuls + VPU/EUP tanh,
    # all on one batch tile resident in VMEM.
    x = x_ref[...]
    h = jnp.tanh(
        jnp.dot(x, w1_ref[...], preferred_element_type=jnp.float32)
        + b1_ref[...])
    h = jnp.tanh(
        jnp.dot(h, w2_ref[...], preferred_element_type=jnp.float32)
        + b2_ref[...])
    o = jnp.tanh(
        jnp.dot(h, w3_ref[...], preferred_element_type=jnp.float32)
        + b3_ref[...])
    out_ref[...] = o.astype(out_ref.dtype)


def prepare_mean_head(params):
    """One-time setup: slice the mean head so the kernel never touches the
    discarded log_std half of mean_layer (halves the third matmul's N and the
    output writeback)."""
    out_dim = params["w3"].shape[1]
    action_dim = out_dim // 2
    p = dict(params)
    p["w3_mu"] = params["w3"][:, :action_dim]
    p["b3_mu"] = params["b3"][:, :action_dim]
    return p


def gauss_policy_mlp_forward(s, params, *, block_b=8192):
    """Returns mu = first half of tanh(mean_layer(tanh(fc2(tanh(fc1(s))))))."""
    w1, b1, w2, b2 = params["w1"], params["b1"], params["w2"], params["b2"]
    w3_mu, b3_mu = params["w3_mu"], params["b3_mu"]

    B, state_dim = s.shape
    hidden = w1.shape[1]
    action_dim = w3_mu.shape[1]

    # --- batch tile selection (generation / VMEM aware) ------------------
    vmem_cap = _vmem_capacity_bytes()
    # Budget ~40% of physical VMEM for the batch-tiled (lane-padded) buffers.
    per_row = 2 * (_f32_block_bytes(8, state_dim) // 8
                   + _f32_block_bytes(8, action_dim) // 8
                   + _f32_block_bytes(8, hidden) // 8)
    max_rows = max((int(0.4 * vmem_cap) // max(per_row, 1)) // 256 * 256, 256)

    if B >= block_b:
        tb = min(block_b, max_rows)
        tb = _round_up(tb, 256)
    else:
        # Small batches: a single grid step covering everything.
        tb = min(_round_up(max(B, 1), 8), max_rows)

    grid = (pl.cdiv(B, tb),)

    est = _vmem_estimate_bytes(tb, state_dim, hidden, action_dim)
    vmem_limit = min(int(0.9 * vmem_cap), max(32 << 20, 2 * est))

    def row_spec(feat):
        # Batch-tiled arrays: new block per grid step (pipelined x / out).
        # Partial final block (B % tb != 0) is masked by Pallas.
        return pl.BlockSpec((tb, feat), lambda i: (i, 0))

    def const_spec(shape):
        # Weights / biases: same block every step -> VMEM-resident, one DMA.
        return pl.BlockSpec(shape, lambda i: (0, 0))

    out = pl.pallas_call(
        _policy_kernel,
        out_shape=jax.ShapeDtypeStruct((B, action_dim), jnp.float32),
        grid=grid,
        in_specs=[
            row_spec(state_dim),
            const_spec(w1.shape), const_spec(b1.shape),
            const_spec(w2.shape), const_spec(b2.shape),
            const_spec(w3_mu.shape), const_spec(b3_mu.shape),
        ],
        out_specs=row_spec(action_dim),
        compiler_params=pltpu.CompilerParams(
            dimension_semantics=("parallel",),
            vmem_limit_bytes=vmem_limit),
    )(s, w1, b1, w2, b2, w3_mu, b3_mu)

    return out


def init_params(key, state_dim, hidden_width, action_dim):
    """Deterministic orthogonal init (gain 1, 1, 0.01), zero biases."""
    k1, k2, k3 = jax.random.split(key, 3)
    orth = jax.nn.initializers.orthogonal

    # PyTorch Linear weight is (out, in); we store its transpose (in, out).
    w1_pt = orth(scale=1.0)(k1, (hidden_width, state_dim), jnp.float32)
    w2_pt = orth(scale=1.0)(k2, (hidden_width, hidden_width), jnp.float32)
    w3_pt = orth(scale=0.01)(k3, (2 * action_dim, hidden_width), jnp.float32)

    return {
        "w1": w1_pt.T, "b1": jnp.zeros((1, hidden_width), jnp.float32),
        "w2": w2_pt.T, "b2": jnp.zeros((1, hidden_width), jnp.float32),
        "w3": w3_pt.T, "b3": jnp.zeros((1, 2 * action_dim), jnp.float32),
    }


def _reference_forward(s, params):
    h = jnp.tanh(s @ params["w1"] + params["b1"])
    h = jnp.tanh(h @ params["w2"] + params["b2"])
    a = jnp.tanh(h @ params["w3"] + params["b3"])
    return a[:, : a.shape[1] // 2]


if __name__ == "__main__":
    # Small, forward-consistent shapes: batch=8, state_dim=16, hidden=32,
    # action_dim=4 (mean_layer outputs 2*action_dim=8).
    batch, state_dim, hidden_width, action_dim = 8, 16, 32, 4

    key = jax.random.PRNGKey(0)
    k_param, k_x = jax.random.split(key)
    params = init_params(k_param, state_dim, hidden_width, action_dim)
    infer_params = prepare_mean_head(params)   # one-time mean-head slice

    forward = jax.jit(gauss_policy_mlp_forward)

    s = jax.random.normal(k_x, (batch, state_dim), dtype=jnp.float32)
    mu = jax.block_until_ready(forward(s, infer_params))

    ref = _reference_forward(s, params)
    assert mu.shape == (batch, action_dim), mu.shape
    assert jnp.allclose(mu, ref, atol=1e-5, rtol=1e-5), "mismatch vs reference"

    # Also exercise the non-divisible / masked-final-block path.
    s2 = jax.random.normal(jax.random.PRNGKey(1), (13, state_dim),
                           dtype=jnp.float32)
    mu2 = jax.block_until_ready(forward(s2, infer_params))
    ref2 = _reference_forward(s2, params)
    assert mu2.shape == (13, action_dim), mu2.shape
    assert jnp.allclose(mu2, ref2, atol=1e-5, rtol=1e-5), "partial-block mismatch"

    print("KERNEL_OK")
</pallas_src>

<mosaic_0001>
module attributes {stable_mosaic.version = 11 : i64} {
  func.func @_policy_kernel(%arg0: i32, %arg1: memref<8x16xf32, #tpu.memory_space<vmem>>, %arg2: memref<16x32xf32, #tpu.memory_space<vmem>>, %arg3: memref<1x32xf32, #tpu.memory_space<vmem>>, %arg4: memref<32x32xf32, #tpu.memory_space<vmem>>, %arg5: memref<1x32xf32, #tpu.memory_space<vmem>>, %arg6: memref<32x4xf32, #tpu.memory_space<vmem>>, %arg7: memref<1x4xf32, #tpu.memory_space<vmem>>, %arg8: memref<8x4xf32, #tpu.memory_space<vmem>>) attributes {dimension_semantics = [#tpu.dimension_semantics<parallel>], iteration_bounds = array<i64: 1>, scalar_prefetch = 0 : i64, scratch_operands = 0 : i64, tpu.core_type = #tpu.core_type<tc>, window_params = [{transform_indices = @transform_0, window_bounds = array<i64: 8, 16>}, {pipeline_mode = #tpu.pipeline_mode<synchronous>, transform_indices = @transform_1, window_bounds = array<i64: 16, 32>}, {pipeline_mode = #tpu.pipeline_mode<synchronous>, transform_indices = @transform_2, window_bounds = array<i64: 1, 32>}, {pipeline_mode = #tpu.pipeline_mode<synchronous>, transform_indices = @transform_3, window_bounds = array<i64: 32, 32>}, {pipeline_mode = #tpu.pipeline_mode<synchronous>, transform_indices = @transform_4, window_bounds = array<i64: 1, 32>}, {pipeline_mode = #tpu.pipeline_mode<synchronous>, transform_indices = @transform_5, window_bounds = array<i64: 32, 4>}, {pipeline_mode = #tpu.pipeline_mode<synchronous>, transform_indices = @transform_6, window_bounds = array<i64: 1, 4>}, {transform_indices = @transform_7, window_bounds = array<i64: 8, 4>}]} {
    %c0 = arith.constant 0 : index
    %c0_0 = arith.constant 0 : index
    %0 = vector.load %arg1[%c0, %c0_0] : memref<8x16xf32, #tpu.memory_space<vmem>>, vector<8x16xf32>
    %c0_1 = arith.constant 0 : index
    %c0_2 = arith.constant 0 : index
    %1 = vector.load %arg2[%c0_1, %c0_2] : memref<16x32xf32, #tpu.memory_space<vmem>>, vector<16x32xf32>
    %cst = arith.constant dense<0.000000e+00> : vector<8x32xf32>
    %2 = tpu.matmul %0, %1, %cst {dimension_numbers = #tpu.dot_dimension_numbers<[1], [0], [0], [1], [0, 0, 1, 1], [], []>} : vector<8x16xf32>, vector<16x32xf32>, vector<8x32xf32> -> vector<8x32xf32>
    %c0_3 = arith.constant 0 : index
    %c0_4 = arith.constant 0 : index
    %3 = vector.load %arg3[%c0_3, %c0_4] : memref<1x32xf32, #tpu.memory_space<vmem>>, vector<1x32xf32>
    %4 = vector.broadcast %3 : vector<1x32xf32> to vector<8x32xf32>
    %5 = arith.addf %2, %4 : vector<8x32xf32>
    %6 = math.tanh %5 : vector<8x32xf32>
    %c0_5 = arith.constant 0 : index
    %c0_6 = arith.constant 0 : index
    %7 = vector.load %arg4[%c0_5, %c0_6] : memref<32x32xf32, #tpu.memory_space<vmem>>, vector<32x32xf32>
    %cst_7 = arith.constant dense<0.000000e+00> : vector<8x32xf32>
    %8 = tpu.matmul %6, %7, %cst_7 {dimension_numbers = #tpu.dot_dimension_numbers<[1], [0], [0], [1], [0, 0, 1, 1], [], []>} : vector<8x32xf32>, vector<32x32xf32>, vector<8x32xf32> -> vector<8x32xf32>
    %c0_8 = arith.constant 0 : index
    %c0_9 = arith.constant 0 : index
    %9 = vector.load %arg5[%c0_8, %c0_9] : memref<1x32xf32, #tpu.memory_space<vmem>>, vector<1x32xf32>
    %10 = vector.broadcast %9 : vector<1x32xf32> to vector<8x32xf32>
    %11 = arith.addf %8, %10 : vector<8x32xf32>
    %12 = math.tanh %11 : vector<8x32xf32>
    %c0_10 = arith.constant 0 : index
    %c0_11 = arith.constant 0 : index
    %13 = vector.load %arg6[%c0_10, %c0_11] : memref<32x4xf32, #tpu.memory_space<vmem>>, vector<32x4xf32>
    %cst_12 = arith.constant dense<0.000000e+00> : vector<8x4xf32>
    %14 = tpu.matmul %12, %13, %cst_12 {dimension_numbers = #tpu.dot_dimension_numbers<[1], [0], [0], [1], [0, 0, 1, 1], [], []>} : vector<8x32xf32>, vector<32x4xf32>, vector<8x4xf32> -> vector<8x4xf32>
    %c0_13 = arith.constant 0 : index
    %c0_14 = arith.constant 0 : index
    %15 = vector.load %arg7[%c0_13, %c0_14] : memref<1x4xf32, #tpu.memory_space<vmem>>, vector<1x4xf32>
    %16 = vector.broadcast %15 : vector<1x4xf32> to vector<8x4xf32>
    %17 = arith.addf %14, %16 : vector<8x4xf32>
    %18 = math.tanh %17 : vector<8x4xf32>
    %c0_15 = arith.constant 0 : index
    %c0_16 = arith.constant 0 : index
    %19 = vector.load %arg8[%c0_15, %c0_16] : memref<8x4xf32, #tpu.memory_space<vmem>>, vector<8x4xf32>
    tpu.vector_store %arg8[%c0_15, %c0_16], %18 {strides = array<i32>} : memref<8x4xf32, #tpu.memory_space<vmem>>, vector<8x4xf32>,
    return
  }
  func.func @transform_0(%arg0: i32) -> (i32, i32) {
    %c0_i32 = arith.constant 0 : i32
    %c0_i32_0 = arith.constant 0 : i32
    return %arg0, %c0_i32 : i32, i32
  }
  func.func @transform_1(%arg0: i32) -> (i32, i32) {
    %c0_i32 = arith.constant 0 : i32
    %c0_i32_0 = arith.constant 0 : i32
    %c0_i32_1 = arith.constant 0 : i32
    return %c0_i32, %c0_i32_0 : i32, i32
  }
  func.func @transform_2(%arg0: i32) -> (i32, i32) {
    %c0_i32 = arith.constant 0 : i32
    %c0_i32_0 = arith.constant 0 : i32
    %c0_i32_1 = arith.constant 0 : i32
    return %c0_i32, %c0_i32_0 : i32, i32
  }
  func.func @transform_3(%arg0: i32) -> (i32, i32) {
    %c0_i32 = arith.constant 0 : i32
    %c0_i32_0 = arith.constant 0 : i32
    %c0_i32_1 = arith.constant 0 : i32
    return %c0_i32, %c0_i32_0 : i32, i32
  }
  func.func @transform_4(%arg0: i32) -> (i32, i32) {
    %c0_i32 = arith.constant 0 : i32
    %c0_i32_0 = arith.constant 0 : i32
    %c0_i32_1 = arith.constant 0 : i32
    return %c0_i32, %c0_i32_0 : i32, i32
  }
  func.func @transform_5(%arg0: i32) -> (i32, i32) {
    %c0_i32 = arith.constant 0 : i32
    %c0_i32_0 = arith.constant 0 : i32
    %c0_i32_1 = arith.constant 0 : i32
    return %c0_i32, %c0_i32_0 : i32, i32
  }
  func.func @transform_6(%arg0: i32) -> (i32, i32) {
    %c0_i32 = arith.constant 0 : i32
    %c0_i32_0 = arith.constant 0 : i32
    %c0_i32_1 = arith.constant 0 : i32
    return %c0_i32, %c0_i32_0 : i32, i32
  }
  func.func @transform_7(%arg0: i32) -> (i32, i32) {
    %c0_i32 = arith.constant 0 : i32
    %c0_i32_0 = arith.constant 0 : i32
    return %arg0, %c0_i32 : i32, i32
  }
}

</mosaic_0001>

<bundles_post_ra>
// kernel: gauss_policy_mlp_forward.1
= control target key start
LH: loop header
LB: loop body
LE: loop exit
PB: predicated region body
PF: predicated region fallthrough
CT: control target
= control target key end

     0   :  { %12 = vsyncpa [#allocation3], 0  ;;  %s510_s0 = inlined_call_operand.vmem [shape: f32[8,16], index: 0, kind: input, shape index: {}]   ;;  %s511_s1 = inlined_call_operand.hbm [shape: f32[16,32], index: 1, kind: input, shape index: {}]   ;;  %s512_s2 = inlined_call_operand.vmem [shape: f32[1,32], index: 2, kind: input, shape index: {}]   ;;  %s513_s3 = inlined_call_operand.vmem [shape: f32[32,32], index: 3, kind: input, shape index: {}]   ;;  %s514_s4 = inlined_call_operand.vmem [shape: f32[1,32], index: 4, kind: input, shape index: {}]   ;;  %s515_s5 = inlined_call_operand.vmem [shape: f32[32,4], index: 5, kind: input, shape index: {}]   ;;  %s516_s6 = inlined_call_operand.hbm [shape: f32[1,4], index: 6, kind: input, shape index: {}]   ;;  %s517_s7 = inlined_call_operand.vmem [shape: f32[8,4], index: 7, kind: output, shape index: {}]  }
   0x1   :  { %13 = vsyncpa [#allocation5], 0  ;;  %s420_s24 = smov [#allocation2]  }
   0x2   :  { %s21_s25 = sshll.u32 %s420_s24, 4  ;;  %s22_s25 = int_to_ptr.vmem [resolvable:$true] %s21_s25 }
   0x3   :  { %s384_s26 = scalar_lea.vmem %s22_s25, 256  ;;  %p389_p1 = scmp.lt.s32.totalorder %s22_s25, %s22_s25 }
   0x4   :  { %p385_p0 = scmp.ne.s32.totalorder %s22_s25, %s384_s26  ;;  %p390_p2 = scmp.lt.s32.totalorder %s384_s26, %s384_s26 }
   0x6   :  { %p391_p3 = por %p390_p2, %p389_p1 }
   0x8   :  { %p392_p4 = pnand %p391_p3, %p385_p0 }
   0xa   :  { %395 = shalt.err (!%p392_p4)
}
   0xb   :  { %s421_s27 = smov 128   ;;  %s422_s28 = smov 8  }
   0xc   :  { %27 = dma.hbm_to_vmem [thread:$0]  %s511_s1, 256, %s22_s25, [#allocation3], %s421_s27, %s421_s27, %s422_s28  }
   0xd   :  { %s423_s8 = smov [#allocation4]  }
   0xe   :  { %s42_s9 = sshll.u32 %s423_s8, 4  ;;  %s43_s9 = int_to_ptr.vmem [resolvable:$true] %s42_s9 }
   0xf   :  { %s404_s10 = scalar_lea.vmem %s43_s9, 16  ;;  %s408_s11 = scalar_lea.vmem %s43_s9, 32 }
  0x10   :  { %p405_p5 = scmp.ne.s32.totalorder %s43_s9, %s404_s10  ;;  %p409_p6 = scmp.lt.s32.totalorder %s43_s9, %s43_s9 }
  0x11   :  { %p410_p7 = scmp.lt.s32.totalorder %s408_s11, %s404_s10 }
  0x13   :  { %p411_p8 = por %p410_p7, %p409_p6 }
  0x15   :  { %p412_p9 = pnand %p411_p8, %p405_p5 }
  0x17   :  { %415 = shalt.err (!%p412_p9)
}
  0x18   :  { %45 = dma.hbm_to_vmem [thread:$0]  %s516_s6, 16, %s43_s9, [#allocation5]  }
  0x19   :  { %416 = dma.done.wait [#allocation3], 256  }
  0x1a   :  { %417 = vsyncadd [#allocation3], 4294967040 }
  0x1b   :  { %418 = dma.done.wait [#allocation5], 16  }
  0x1c   :  { %419 = vsyncadd [#allocation5], 4294967280  ;;  %v424_v0 = vmov 0.0   ;;  %vm425_vm0 = vmmov 0   ;;  %v54_v1 = vld [vmem:[#allocation2 + $0x8] sm:$0xff]  ;;  %v53_v2 = vld [vmem:[#allocation2] sm:$0xff] }
  0x1d   :  { %335 = vmatprep.subr.mxu0 %v424_v0  ;;  %339 = vmatprep.mubr.msk.f32.mxu0 %vm425_vm0, %v424_v0  ;;  %v52_v3 = vld [vmem:[%s510_s0] sm:$0xff]  ;;  %vm62_vm1 = vcmask 130048   ;;  %v140_v4 = vld [vmem:[%s513_s3 + $0x18] sm:$0xff]  ;;  %v139_v5 = vld [vmem:[%s513_s3 + $0x10] sm:$0xff]  ;;  %vm148_vm2 = vcmask 261120   ;;  %vm308_vm3 = vcmask 31744  }
  0x1e   :  { %342 = vmatprep.subr.mxu1 %v424_v0  ;;  %350 = vmatprep.mubr.msk.f32.mxu1 %vm425_vm0, %v424_v0  ;;  %v138_v6 = vld [vmem:[%s513_s3 + $0x8] sm:$0xff]  ;;  %v137_v7 = vld [vmem:[%s513_s3] sm:$0xff]  ;;  %v226_v13 = vld [vmem:[%s515_s5 + $0x18] sm:$0xff] }
  0x1f   :  { %336 = vmatpush3.msra.mxu0 %v54_v1  ;;  %343 = vmatpush3.msra.mxu1 %v140_v4  ;;  %v316_v8 = vld [vmem:[%s512_s2] ss:$0 sm:$0xff]  ;;  %v225_v14 = vld [vmem:[%s515_s5 + $0x10] sm:$0xff]  ;;  %v224_v15 = vld [vmem:[%s515_s5 + $0x8] sm:$0xff] }
  0x20   :  { %337 = vmatprep.subr.mxu0 %v424_v0  ;;  %344 = vmatprep.subr.mxu1 %v424_v0  ;;  %v223_v16 = vld [vmem:[%s515_s5] sm:$0xff]  ;;  %v320_v22 = vld [vmem:[#allocation4] ss:$0 sm:$0xff] }
  0x21   :  { %338 = vmatpush3.msra.mxu0 %v53_v2  ;;  %345 = vmatpush3.msra.mxu1 %v139_v5  ;;  %v318_v17 = vld [vmem:[%s514_s4] ss:$0 sm:$0xff] }
  0x22   :  { %340 = vmatmul.mubr.msk.f32.vlgmr.msra.gmra.mxu0 %vm62_vm1, %v52_v3  ;;  %353 = vmatprep.subr.mxu0 %v424_v0 }
  0x23   :  { %361 = vmatprep.mubr.msk.f32.mxu0 %vm425_vm0, %v424_v0  ;;  %346 = vmatprep.subr.mxu1 %v424_v0 }
  0x24   :  { %347 = vmatpush3.msra.mxu1 %v138_v6  ;;  %354 = vmatpush3.msra.mxu0 %v226_v13 }
  0x25   :  { %348 = vmatprep.subr.mxu1 %v424_v0  ;;  %355 = vmatprep.subr.mxu0 %v424_v0 }
  0x26   :  { %349 = vmatpush3.msra.mxu1 %v137_v7  ;;  %356 = vmatpush3.msra.mxu0 %v225_v14 }
  0x27   :  { %357 = vmatprep.subr.mxu0 %v424_v0 }
  0x28   :  { %358 = vmatpush3.msra.mxu0 %v224_v15 }
  0x29   :  { %359 = vmatprep.subr.mxu0 %v424_v0 }
  0x2a   :  { %360 = vmatpush3.msra.mxu0 %v223_v16 }
  0xe2   :  { %v132_v9 = vpop.f32.mrf.mxu0 }
  0xe3   :  { %v133_v10 = vadd.f32 %v316_v8, %v132_v9 }
  0xe4   :  { %v341_v11 = vpop.f32.mrf.mxu0 }
  0xe5   :  { %370 = vtanh.f32 %v133_v10 }
  0xf2   :  { %v371_v12 = vpop.eup %370 }
  0xf3   :  { %351 = vmatmul.mubr.msk.f32.vlgmr.msra.gmra.mxu1 %vm148_vm2, %v371_v12 }
 0x1b3   :  { %v218_v18 = vpop.f32.mrf.mxu1 }
 0x1b4   :  { %v219_v19 = vadd.f32 %v318_v17, %v218_v18 }
 0x1b5   :  { %v352_v20 = vpop.f32.mrf.mxu1 }
 0x1b6   :  { %372 = vtanh.f32 %v219_v19 }
 0x1c3   :  { %v373_v21 = vpop.eup %372 }
 0x1c4   :  { %362 = vmatmul.mubr.msk.f32.vlgmr.msra.gmra.mxu0 %vm148_vm2, %v373_v21 }
 0x284   :  { %v303_v23 = vpop.f32.mrf.mxu0 }
 0x285   :  { %v304_v24 = vadd.f32 %v320_v22, %v303_v23 }
 0x286   :  { %v363_v25 = vpop.f32.mrf.mxu0 }
 0x287   :  { %374 = vtanh.f32 %v304_v24 }
 0x294   :  { %v375_v26 = vpop.eup %374 }
 0x295   :  { %309 = vst.msk [vmem:[%s517_s7] sm:$0xff] %vm308_vm3, %v375_v26 }
 0x296   :  { %314 = vsyncpa [#allocation3], 1 }
 0x297   :  { %315 = vsyncpa [#allocation5], 1 }

</bundles_post_ra>
